<compile_context>
chip_gen: v7x
topology: tpu7x:2x2x1
jax: 0.10.0
libtpu: 0.0.40
codegen_flags: <defaults>
</compile_context>

<pallas_src>
import jax
import jax.numpy as jnp
from jax.experimental import pallas as pl
from jax.experimental.pallas import tpu as pltpu


def afford_mlp_kernel(x_ref, w1_ref, b1_ref, w2_ref, b2_ref, o_ref):
    # x:  (TILE_B, C_in)   w1: (C_in, H)   b1: (1, H)
    # w2: (H, C_out)       b2: (1, C_out)  o : (TILE_B, C_out)
    tile_b = x_ref.shape[0]
    c_in, hidden = w1_ref.shape

    x = x_ref[...].astype(jnp.float32)
    w1 = w1_ref[...].astype(jnp.float32)

    # Layer 1 on the VPU: C_in (=3) broadcast-FMAs instead of a K=3 MXU pass.
    h = jnp.broadcast_to(b1_ref[...].astype(jnp.float32), (tile_b, hidden))
    for c in range(c_in):  # small static unroll (C_in == 3 by default)
        h = h + x[:, c:c + 1] * w1[c:c + 1, :]
    h = jnp.maximum(h, 0.0)  # ReLU (use_layernorm=False -> Identity before it)

    # Layer 2 on the MXU: (TILE_B, H) @ (H, C_out) in w2's dtype (bf16 by
    # default) with f32 accumulation.
    out = jnp.dot(h.astype(w2_ref.dtype), w2_ref[...],
                  preferred_element_type=jnp.float32)
    # Fused bias + cast directly into the output store (no extra f32 temp).
    o_ref[...] = (out + b2_ref[...].astype(jnp.float32)).astype(o_ref.dtype)


def afford_mlp_forward(x, w1, b1, w2, b2, *, tile_b=2048,
                       matmul_dtype=jnp.bfloat16, out_dtype=None):
    """x: (B, C_in); w1: (C_in, H); b1: (H,); w2: (H, C_out); b2: (C_out,)."""
    B, C_in = x.shape
    hidden, C_out = w2.shape
    out_dtype = jnp.dtype(x.dtype if out_dtype is None else out_dtype)

    # bf16 weights for the layer-2 MXU matmul (accumulation stays f32 in-kernel).
    w2c = w2.astype(matmul_dtype)
    b1_2d = b1.reshape(1, hidden)
    b2_2d = b2.reshape(1, C_out)

    # Tile selection.  If the whole batch fits in one tile, use a full-array
    # block (always layout-legal).  Otherwise use a multiple of 16 rows
    # (satisfies the sublane constraint for f32 and bf16 blocks) and let the
    # partial final block be masked by Pallas -- no pad, no post-slice copy.
    if B <= tile_b:
        tile_b = B
    else:
        tile_b = max((tile_b // 16) * 16, 16)
    grid = (pl.cdiv(B, tile_b),)

    # Explicit scoped-VMEM budget: double-buffered streamed operands + resident
    # weights + headroom.  Kept well under v7x's 64 MiB physical per TC.
    buf_bytes = (
        2 * tile_b * C_in * x.dtype.itemsize                     # input stream
        + 2 * tile_b * C_out * out_dtype.itemsize                # output stream
        + 2 * (w1.size * w1.dtype.itemsize
               + w2c.size * w2c.dtype.itemsize
               + b1.size * b1.dtype.itemsize
               + b2.size * b2.dtype.itemsize)                    # resident params
    )
    vmem_limit = int(min(buf_bytes + (8 << 20), 48 << 20))

    # Advisory cost hint so XLA can schedule neighbors around this custom call.
    cost = pl.CostEstimate(
        flops=2 * B * (C_in * hidden + hidden * C_out),
        transcendentals=0,
        bytes_accessed=int(B * C_in * x.dtype.itemsize
                           + B * C_out * out_dtype.itemsize
                           + w1.size * w1.dtype.itemsize
                           + w2c.size * w2c.dtype.itemsize
                           + b1.size * b1.dtype.itemsize
                           + b2.size * b2.dtype.itemsize),
    )

    return pl.pallas_call(
        afford_mlp_kernel,
        out_shape=jax.ShapeDtypeStruct((B, C_out), out_dtype),
        grid=grid,
        in_specs=[
            pl.BlockSpec((tile_b, C_in), lambda i: (i, 0)),   # streamed per step
            pl.BlockSpec((C_in, hidden), lambda i: (0, 0)),   # VMEM-resident
            pl.BlockSpec((1, hidden), lambda i: (0, 0)),      # VMEM-resident
            pl.BlockSpec((hidden, C_out), lambda i: (0, 0)),  # VMEM-resident
            pl.BlockSpec((1, C_out), lambda i: (0, 0)),       # VMEM-resident
        ],
        out_specs=pl.BlockSpec((tile_b, C_out), lambda i: (i, 0)),
        compiler_params=pltpu.CompilerParams(
            dimension_semantics=("parallel",),   # shards across v7x's 2 TCs
            vmem_limit_bytes=vmem_limit,
        ),
        cost_estimate=cost,
    )(x, w1, b1_2d, w2c, b2_2d)


def init_params(key, in_channels=3, hidden=64, out_channels=1024, dtype=jnp.float32):
    """Deterministic init mimicking PyTorch nn.Linear default (U(-1/sqrt(fan_in), 1/sqrt(fan_in)))."""
    k1, k2, k3, k4 = jax.random.split(key, 4)
    bound1 = 1.0 / (in_channels ** 0.5)
    bound2 = 1.0 / (hidden ** 0.5)
    # Stored as (in, out) so the kernel does x @ W.
    w1 = jax.random.uniform(k1, (in_channels, hidden), dtype, -bound1, bound1)
    b1 = jax.random.uniform(k2, (hidden,), dtype, -bound1, bound1)
    w2 = jax.random.uniform(k3, (hidden, out_channels), dtype, -bound2, bound2)
    b2 = jax.random.uniform(k4, (out_channels,), dtype, -bound2, bound2)
    return w1, b1, w2, b2


if __name__ == "__main__":
    key = jax.random.PRNGKey(0)
    kx, kp = jax.random.split(key)

    # Module defaults: in_channels=3, block_channel=[64], out_channels=1024.
    # Small demo shapes; production batches (>=4K rows) are what the tiling,
    # VMEM budget and megacore sharding are sized for.
    B, C_IN, HIDDEN, C_OUT = 8, 3, 64, 1024

    x = jax.random.normal(kx, (B, C_IN), jnp.float32)
    w1, b1, w2, b2 = init_params(kp, C_IN, HIDDEN, C_OUT)

    out = afford_mlp_forward(x, w1, b1, w2, b2)
    out = jax.block_until_ready(out)

    # Pure-JAX f32 reference of the module's forward.  The kernel uses bf16
    # weights for the layer-2 matmul (f32 accumulation), so tolerance reflects
    # bf16 rounding of a K=64 contraction with O(1) values.
    ref = jnp.maximum(x @ w1 + b1, 0.0) @ w2 + b2
    assert out.shape == (B, C_OUT)
    assert out.dtype == x.dtype
    assert jnp.allclose(out, ref, atol=3e-2, rtol=1e-2)

    print("KERNEL_OK")
</pallas_src>

<mosaic_0001>
module attributes {stable_mosaic.version = 11 : i64} {
  func.func @afford_mlp_kernel(%arg0: i32, %arg1: memref<8x3xf32, #tpu.memory_space<vmem>>, %arg2: memref<3x64xf32, #tpu.memory_space<vmem>>, %arg3: memref<1x64xf32, #tpu.memory_space<vmem>>, %arg4: memref<64x1024xbf16, #tpu.memory_space<vmem>>, %arg5: memref<1x1024xf32, #tpu.memory_space<vmem>>, %arg6: memref<8x1024xf32, #tpu.memory_space<vmem>>) attributes {dimension_semantics = [#tpu.dimension_semantics<parallel>], iteration_bounds = array<i64: 1>, scalar_prefetch = 0 : i64, scratch_operands = 0 : i64, tpu.core_type = #tpu.core_type<tc>, window_params = [{transform_indices = @transform_0, window_bounds = array<i64: 8, 3>}, {pipeline_mode = #tpu.pipeline_mode<synchronous>, transform_indices = @transform_1, window_bounds = array<i64: 3, 64>}, {pipeline_mode = #tpu.pipeline_mode<synchronous>, transform_indices = @transform_2, window_bounds = array<i64: 1, 64>}, {pipeline_mode = #tpu.pipeline_mode<synchronous>, transform_indices = @transform_3, window_bounds = array<i64: 64, 1024>}, {pipeline_mode = #tpu.pipeline_mode<synchronous>, transform_indices = @transform_4, window_bounds = array<i64: 1, 1024>}, {transform_indices = @transform_5, window_bounds = array<i64: 8, 1024>}]} {
    %c0 = arith.constant 0 : index
    %c0_0 = arith.constant 0 : index
    %0 = vector.load %arg1[%c0, %c0_0] : memref<8x3xf32, #tpu.memory_space<vmem>>, vector<8x3xf32>
    %c0_1 = arith.constant 0 : index
    %c0_2 = arith.constant 0 : index
    %1 = vector.load %arg2[%c0_1, %c0_2] : memref<3x64xf32, #tpu.memory_space<vmem>>, vector<3x64xf32>
    %c0_3 = arith.constant 0 : index
    %c0_4 = arith.constant 0 : index
    %2 = vector.load %arg3[%c0_3, %c0_4] : memref<1x64xf32, #tpu.memory_space<vmem>>, vector<1x64xf32>
    %3 = vector.shape_cast %2 : vector<1x64xf32> to vector<1x64xf32>
    %4 = vector.broadcast %3 : vector<1x64xf32> to vector<8x64xf32>
    %5 = vector.extract_strided_slice %0 {offsets = [0, 0], sizes = [8, 1], strides = [1, 1]} : vector<8x3xf32> to vector<8x1xf32>
    %6 = vector.extract_strided_slice %1 {offsets = [0, 0], sizes = [1, 64], strides = [1, 1]} : vector<3x64xf32> to vector<1x64xf32>
    %7 = vector.broadcast %5 : vector<8x1xf32> to vector<8x64xf32>
    %8 = vector.broadcast %6 : vector<1x64xf32> to vector<8x64xf32>
    %9 = arith.mulf %7, %8 : vector<8x64xf32>
    %10 = arith.addf %4, %9 : vector<8x64xf32>
    %11 = vector.extract_strided_slice %0 {offsets = [0, 1], sizes = [8, 1], strides = [1, 1]} : vector<8x3xf32> to vector<8x1xf32>
    %12 = vector.extract_strided_slice %1 {offsets = [1, 0], sizes = [1, 64], strides = [1, 1]} : vector<3x64xf32> to vector<1x64xf32>
    %13 = vector.broadcast %11 : vector<8x1xf32> to vector<8x64xf32>
    %14 = vector.broadcast %12 : vector<1x64xf32> to vector<8x64xf32>
    %15 = arith.mulf %13, %14 : vector<8x64xf32>
    %16 = arith.addf %10, %15 : vector<8x64xf32>
    %17 = vector.extract_strided_slice %0 {offsets = [0, 2], sizes = [8, 1], strides = [1, 1]} : vector<8x3xf32> to vector<8x1xf32>
    %18 = vector.extract_strided_slice %1 {offsets = [2, 0], sizes = [1, 64], strides = [1, 1]} : vector<3x64xf32> to vector<1x64xf32>
    %19 = vector.broadcast %17 : vector<8x1xf32> to vector<8x64xf32>
    %20 = vector.broadcast %18 : vector<1x64xf32> to vector<8x64xf32>
    %21 = arith.mulf %19, %20 : vector<8x64xf32>
    %22 = arith.addf %16, %21 : vector<8x64xf32>
    %cst = arith.constant 0.000000e+00 : f32
    %23 = vector.broadcast %cst : f32 to vector<8x64xf32>
    %24 = arith.maximumf %22, %23 : vector<8x64xf32>
    %25 = arith.truncf %24 : vector<8x64xf32> to vector<8x64xbf16>
    %c0_5 = arith.constant 0 : index
    %c0_6 = arith.constant 0 : index
    %26 = vector.load %arg4[%c0_5, %c0_6] : memref<64x1024xbf16, #tpu.memory_space<vmem>>, vector<64x1024xbf16>
    %cst_7 = arith.constant dense<0.000000e+00> : vector<8x1024xf32>
    %27 = tpu.matmul %25, %26, %cst_7 {dimension_numbers = #tpu.dot_dimension_numbers<[1], [0], [0], [1], [0, 0, 1, 1], [], []>} : vector<8x64xbf16>, vector<64x1024xbf16>, vector<8x1024xf32> -> vector<8x1024xf32>
    %c0_8 = arith.constant 0 : index
    %c0_9 = arith.constant 0 : index
    %28 = vector.load %arg5[%c0_8, %c0_9] : memref<1x1024xf32, #tpu.memory_space<vmem>>, vector<1x1024xf32>
    %29 = vector.broadcast %28 : vector<1x1024xf32> to vector<8x1024xf32>
    %30 = arith.addf %27, %29 : vector<8x1024xf32>
    %c0_10 = arith.constant 0 : index
    %c0_11 = arith.constant 0 : index
    %31 = vector.load %arg6[%c0_10, %c0_11] : memref<8x1024xf32, #tpu.memory_space<vmem>>, vector<8x1024xf32>
    tpu.vector_store %arg6[%c0_10, %c0_11], %30 {strides = array<i32>} : memref<8x1024xf32, #tpu.memory_space<vmem>>, vector<8x1024xf32>,
    return
  }
  func.func @transform_0(%arg0: i32) -> (i32, i32) {
    %c0_i32 = arith.constant 0 : i32
    %c0_i32_0 = arith.constant 0 : i32
    return %arg0, %c0_i32 : i32, i32
  }
  func.func @transform_1(%arg0: i32) -> (i32, i32) {
    %c0_i32 = arith.constant 0 : i32
    %c0_i32_0 = arith.constant 0 : i32
    %c0_i32_1 = arith.constant 0 : i32
    return %c0_i32, %c0_i32_0 : i32, i32
  }
  func.func @transform_2(%arg0: i32) -> (i32, i32) {
    %c0_i32 = arith.constant 0 : i32
    %c0_i32_0 = arith.constant 0 : i32
    %c0_i32_1 = arith.constant 0 : i32
    return %c0_i32, %c0_i32_0 : i32, i32
  }
  func.func @transform_3(%arg0: i32) -> (i32, i32) {
    %c0_i32 = arith.constant 0 : i32
    %c0_i32_0 = arith.constant 0 : i32
    %c0_i32_1 = arith.constant 0 : i32
    return %c0_i32, %c0_i32_0 : i32, i32
  }
  func.func @transform_4(%arg0: i32) -> (i32, i32) {
    %c0_i32 = arith.constant 0 : i32
    %c0_i32_0 = arith.constant 0 : i32
    %c0_i32_1 = arith.constant 0 : i32
    return %c0_i32, %c0_i32_0 : i32, i32
  }
  func.func @transform_5(%arg0: i32) -> (i32, i32) {
    %c0_i32 = arith.constant 0 : i32
    %c0_i32_0 = arith.constant 0 : i32
    return %arg0, %c0_i32 : i32, i32
  }
}

</mosaic_0001>

<bundles_post_ra>
// kernel: tpu_custom_call.1
= control target key start
LH: loop header
LB: loop body
LE: loop exit
PB: predicated region body
PF: predicated region fallthrough
CT: control target
= control target key end

     0   :  { %10 = vsyncpa [#allocation3], 0  ;;  %s703_s0 = inlined_call_operand.vmem [shape: f32[8,3], index: 0, kind: input, shape index: {}]   ;;  %s704_s1 = inlined_call_operand.vmem [shape: f32[3,64], index: 1, kind: input, shape index: {}]   ;;  %s705_s2 = inlined_call_operand.vmem [shape: f32[1,64], index: 2, kind: input, shape index: {}]   ;;  %s706_s3 = inlined_call_operand.hbm [shape: bf16[64,1024], index: 3, kind: input, shape index: {}]   ;;  %s707_s4 = inlined_call_operand.vmem [shape: f32[1,1024], index: 4, kind: input, shape index: {}]   ;;  %s708_s5 = inlined_call_operand.hbm [shape: f32[8,1024], index: 5, kind: output, shape index: {}]  }
   0x1   :  { %11 = vsyncpa [#allocation4], 0  ;;  %s599_s18 = smov [#allocation2]   ;;  %s551_s22 = scalar_lea.hbm %s706_s3, 4096 }
   0x2   :  { %s23_s19 = sshll.u32 %s599_s18, 4  ;;  %p552_p0 = scmp.ne.s32.totalorder %s706_s3, %s551_s22  ;;  %s24_s19 = int_to_ptr.vmem [resolvable:$true] %s23_s19 }
   0x3   :  { %p555_p1 = scmp.lt.u32.totalorder %s551_s22, %s706_s3 }
   0x5   :  { %p557_p2 = pnand %p555_p1, %p552_p0 }
   0x7   :  { %560 = shalt.err (!%p557_p2)
}
   0x8   :  { %s561_s27 = scalar_lea.vmem %s24_s19, 4096  ;;  %p566_p4 = scmp.lt.s32.totalorder %s24_s19, %s24_s19 }
   0x9   :  { %p562_p3 = scmp.ne.s32.totalorder %s24_s19, %s561_s27  ;;  %p567_p5 = scmp.lt.s32.totalorder %s561_s27, %s561_s27 }
   0xb   :  { %p568_p6 = por %p567_p5, %p566_p4 }
   0xd   :  { %p569_p7 = pnand %p568_p6, %p562_p3 }
   0xf   :  { %572 = shalt.err (!%p569_p7)
}
  0x10   :  { %s600_s28 = smov 512   ;;  %s601_s29 = smov 32  }
  0x11   :  { %29 = dma.hbm_to_vmem [thread:$0]  %s706_s3, 4096, %s24_s19, [#allocation3], %s600_s28, %s600_s28, %s601_s29  }
  0x12   :  { %595 = dma.done.wait [#allocation3], 4096  }
  0x13   :  { %596 = vsyncadd [#allocation3], 4294963200  ;;  %v602_v0 = vmov 0   ;;  %v603_v1 = vmov 2   ;;  %v36_v2 = vld [vmem:[%s703_s0] sm:$0xff]  ;;  %v78_v3 = vld [vmem:[#allocation2] sm:$0xff]  ;;  %v50_v44 = vlaneseq }
  0x14   :  { %547 = vset.pattern.permute.xlu0 %v602_v0  ;;  %549 = vset.pattern.permute.xlu1 %v603_v1  ;;  %v82_v4 = vld [vmem:[#allocation2 + $0x20] sm:$0xff]  ;;  %v79_v6 = vld [vmem:[#allocation2 + $0x8] sm:$0xff]  ;;  %v604_v21 = vmov 1   ;;  %v80_v35 = vld [vmem:[#allocation2 + $0x10] sm:$0xff]  ;;  %vm312_vm0 = vcmask 523264  }
  0x15   :  { %348 = vmatprep.mubr.bf16.mxu0 %v602_v0  ;;  %389 = vmatprep.mubr.bf16.mxu1 %v602_v0  ;;  %v505_v5 = vcombine.high %v78_v3, %v82_v4  ;;  %v83_v7 = vld [vmem:[#allocation2 + $0x28] sm:$0xff]  ;;  %v504_v8 = vcombine.low %v78_v3, %v82_v4  ;;  %v86_v11 = vld [vmem:[#allocation2 + $0x40] sm:$0xff]  ;;  %v84_v36 = vld [vmem:[#allocation2 + $0x30] sm:$0xff]  ;;  %v654_v45 = vshrl.u32 %v50_v44, 7 }
  0x16   :  { %47 = vperm.xlu0 %547, %v36_v2   ;;  %67 = vperm.xlu1 %549, %v36_v2   ;;  %v507_v9 = vcombine.high %v79_v6, %v83_v7  ;;  %v506_v10 = vcombine.low %v79_v6, %v83_v7  ;;  %v90_v12 = vld [vmem:[#allocation2 + $0x60] sm:$0xff]  ;;  %v87_v14 = vld [vmem:[#allocation2 + $0x48] sm:$0xff]  ;;  %v81_v37 = vld [vmem:[#allocation2 + $0x18] sm:$0xff]  ;;  %v509_v39 = vcombine.high %v80_v35, %v84_v36 }
  0x17   :  { %316 = vmatprep.subr.bf16.mxu0 %v505_v5  ;;  %v513_v13 = vcombine.high %v86_v11, %v90_v12  ;;  %v91_v15 = vld [vmem:[#allocation2 + $0x68] sm:$0xff]  ;;  %v512_v17 = vcombine.low %v86_v11, %v90_v12  ;;  %v94_v18 = vld [vmem:[#allocation2 + $0x80] sm:$0xff]  ;;  %v85_v40 = vld [vmem:[#allocation2 + $0x38] sm:$0xff]  ;;  %v508_v41 = vcombine.low %v80_v35, %v84_v36  ;;  %v52_v46 = vsub.s32 0, %v654_v45 }
  0x18   :  { %357 = vmatprep.subr.bf16.mxu1 %v507_v9  ;;  %317 = vmatpush1.bf16.msra.mxu0 %v504_v8  ;;  %v515_v16 = vcombine.high %v87_v14, %v91_v15  ;;  %v98_v19 = vld [vmem:[#allocation2 + $0xa0] sm:$0xff]  ;;  %v95_v20 = vld [vmem:[#allocation2 + $0x88] sm:$0xff]  ;;  %v514_v22 = vcombine.low %v87_v14, %v91_v15  ;;  %v510_v42 = vcombine.low %v81_v37, %v85_v40  ;;  %v37_v47 = vld [vmem:[%s704_s1] sm:$0x7]  ;;  %v62_v49 = vsub.s32 1, %v654_v45 }
  0x19   :  { %358 = vmatpush1.bf16.msra.mxu1 %v506_v10  ;;  %v521_v23 = vcombine.high %v94_v18, %v98_v19  ;;  %v99_v24 = vld [vmem:[#allocation2 + $0xa8] sm:$0xff]  ;;  %318 = vmatprep.subr.bf16.mxu0 %v513_v13  ;;  %v520_v26 = vcombine.low %v94_v18, %v98_v19  ;;  %v102_v27 = vld [vmem:[#allocation2 + $0xc0] sm:$0xff]  ;;  %v511_v43 = vcombine.high %v81_v37, %v85_v40  ;;  %v72_v50 = vsub.s32 2, %v654_v45  ;;  %v503_v55 = vld [vmem:[%s705_s2] ss:$0 sm:$0xff] }
  0x1a   :  { %548 = vset.pattern.permute.xlu0 %v604_v21  ;;  %v523_v25 = vcombine.high %v95_v20, %v99_v24  ;;  %359 = vmatprep.subr.bf16.mxu1 %v515_v16  ;;  %v106_v28 = vld [vmem:[#allocation2 + $0xe0] sm:$0xff]  ;;  %v103_v29 = vld [vmem:[#allocation2 + $0xc8] sm:$0xff]  ;;  %v522_v30 = vcombine.low %v95_v20, %v99_v24  ;;  %v53_v48 = vrot.slane %v37_v47, %v52_v46  ;;  %v88_v63 = vld [vmem:[#allocation2 + $0x50] sm:$0xff]  ;;  %v138_v44 = vsub.s32 6, %v654_v45 }
  0x1b   :  { %57 = vperm.xlu0 %548, %v36_v2   ;;  %v529_v31 = vcombine.high %v102_v27, %v106_v28  ;;  %v107_v32 = vld [vmem:[#allocation2 + $0xe8] sm:$0xff]  ;;  %v528_v34 = vcombine.low %v102_v27, %v106_v28  ;;  %v63_v53 = vrot.slane %v37_v47, %v62_v49  ;;  %v73_v54 = vrot.slane %v37_v47, %v72_v50  ;;  %v89_v2 = vld [vmem:[#allocation2 + $0x58] sm:$0xff]  ;;  %v96_v8 = vld [vmem:[#allocation2 + $0x90] sm:$0xff] }
  0x1c   :  { %319 = vmatpush1.bf16.msra.mxu0 %v512_v17  ;;  %v531_v33 = vcombine.high %v103_v29, %v107_v32  ;;  %v530_v38 = vcombine.low %v103_v29, %v107_v32  ;;  %v93_v3 = vld [vmem:[#allocation2 + $0x78] sm:$0xff]  ;;  %v100_v9 = vld [vmem:[#allocation2 + $0xb0] sm:$0xff]  ;;  %v142_v47 = vsub.s32 7, %v654_v45 }
  0x1d   :  { %360 = vmatpush1.bf16.msra.mxu1 %v514_v22  ;;  %320 = vmatprep.subr.bf16.mxu0 %v521_v23  ;;  %v519_v7 = vcombine.high %v89_v2, %v93_v3  ;;  %v97_v10 = vld [vmem:[#allocation2 + $0x98] sm:$0xff]  ;;  %v518_v13 = vcombine.low %v89_v2, %v93_v3  ;;  %v525_v14 = vcombine.high %v96_v8, %v100_v9  ;;  %v104_v16 = vld [vmem:[#allocation2 + $0xd0] sm:$0xff] }
  0x1e   :  { %361 = vmatprep.subr.bf16.mxu1 %v523_v25  ;;  %v101_v11 = vld [vmem:[#allocation2 + $0xb8] sm:$0xff]  ;;  %v108_v17 = vld [vmem:[#allocation2 + $0xf0] sm:$0xff]  ;;  %v524_v20 = vcombine.low %v96_v8, %v100_v9 }
  0x1f   :  { %550 = vset.pattern.permute.xlu0 %v603_v1  ;;  %v92_v1 = vld [vmem:[#allocation2 + $0x70] sm:$0xff]  ;;  %v527_v15 = vcombine.high %v97_v10, %v101_v11  ;;  %v105_v18 = vld [vmem:[#allocation2 + $0xd8] sm:$0xff]  ;;  %v526_v21 = vcombine.low %v97_v10, %v101_v11  ;;  %v533_v22 = vcombine.high %v104_v16, %v108_v17  ;;  %v532_v24 = vcombine.low %v104_v16, %v108_v17 }
  0x20   :  { %321 = vmatpush1.bf16.msra.mxu0 %v520_v26  ;;  %v517_v6 = vcombine.high %v88_v63, %v92_v1  ;;  %v516_v12 = vcombine.low %v88_v63, %v92_v1  ;;  %v109_v19 = vld [vmem:[#allocation2 + $0xf8] sm:$0xff]  ;;  %v126_v26 = vsub.s32 3, %v654_v45 }
  0x21   :  { %362 = vmatpush1.bf16.msra.mxu1 %v522_v30  ;;  %322 = vmatprep.subr.bf16.mxu0 %v529_v31  ;;  %v535_v23 = vcombine.high %v105_v18, %v109_v19  ;;  %v534_v25 = vcombine.low %v105_v18, %v109_v19 }
  0x22   :  { %363 = vmatprep.subr.bf16.mxu1 %v531_v33 }
  0x24   :  { %323 = vmatpush1.bf16.msra.mxu0 %v528_v34 }
  0x25   :  { %364 = vmatpush1.bf16.msra.mxu1 %v530_v38  ;;  %398 = vmatprep.subr.bf16.mxu0 %v509_v39 }
  0x26   :  { %439 = vmatprep.subr.bf16.mxu1 %v511_v43  ;;  %v130_v43 = vsub.s32 4, %v654_v45 }
  0x95   :  { %v48_v51 = vpop.permute.xlu0 %47  ;;  %v68_v56 = vpop.permute.xlu1 %67 }
  0x96   :  { %v54_v52 = vmul.f32 %v53_v48, %v48_v51  ;;  %v74_v60 = vmul.f32 %v73_v54, %v68_v56 }
  0x98   :  { %v55_v58 = vadd.f32 %v503_v55, %v54_v52 }
  0x9a   :  { %v58_v57 = vpop.permute.xlu0 %57 }
  0x9b   :  { %v64_v59 = vmul.f32 %v63_v53, %v58_v57 }
  0x9d   :  { %v65_v61 = vadd.f32 %v64_v59, %v55_v58 }
  0x9f   :  { %v75_v62 = vadd.f32 %v74_v60, %v65_v61 }
  0xa1   :  { %v76_v4 = vmax.f32 %v75_v62, 0.0 }
  0xa3   :  { %v77_v5 = vpack.c.bf16 %v76_v4, %v76_v4 }
  0xa5   :  { %536 = vmatmul.mubr.msk.bf16.vlgmr.msra.gmra.mrb[0].mxu0 %vm312_vm0, %v77_v5  ;;  %537 = vmatmul.mubr.msk.bf16.vlgmr.msra.gmra.mrb[0].mxu1 %vm312_vm0, %v77_v5 }
  0xa6   :  { %399 = vmatpush1.bf16.msra.mxu0 %v508_v41  ;;  %440 = vmatpush1.bf16.msra.mxu1 %v510_v42 }
  0xa7   :  { %400 = vmatprep.subr.bf16.mxu0 %v517_v6  ;;  %441 = vmatprep.subr.bf16.mxu1 %v519_v7 }
  0xa8   :  { %430 = vmatprep.mubr.bf16.mxu0 %v602_v0  ;;  %471 = vmatprep.mubr.bf16.mxu1 %v602_v0  ;;  %v110_v0 = vld [vmem:[%s707_s4] sm:$0xff]  ;;  %s605_s4 = smov [#allocation5]  }
  0xa9   :  { %v115_v27 = vrot.slane %v110_v0, %v52_v46  ;;  %v123_v28 = vrot.slane %v110_v0, %v72_v50  ;;  %v119_v29 = vrot.slane %v110_v0, %v62_v49  ;;  %v127_v30 = vrot.slane %v110_v0, %v126_v26  ;;  %s494_s11 = sshll.u32 %s605_s4, 4  ;;  %s495_s11 = int_to_ptr.vmem [resolvable:$true] %s494_s11 }
  0xaa   :  { %401 = vmatpush1.bf16.msra.mxu0 %v516_v12  ;;  %442 = vmatpush1.bf16.msra.mxu1 %v518_v13  ;;  %v134_v46 = vsub.s32 5, %v654_v45  ;;  %v131_v48 = vrot.slane %v110_v0, %v130_v43  ;;  %v139_v49 = vrot.slane %v110_v0, %v138_v44  ;;  %v143_v51 = vrot.slane %v110_v0, %v142_v47  ;;  %s573_s12 = scalar_lea.vmem %s495_s11, 1024  ;;  %p578_p9 = scmp.lt.s32.totalorder %s495_s11, %s495_s11 }
  0xab   :  { %402 = vmatprep.subr.bf16.mxu0 %v525_v14  ;;  %443 = vmatprep.subr.bf16.mxu1 %v527_v15  ;;  %p574_p8 = scmp.ne.s32.totalorder %s495_s11, %s573_s12  ;;  %p579_p10 = scmp.lt.s32.totalorder %s573_s12, %s573_s12 }
  0xac   :  { %v135_v50 = vrot.slane %v110_v0, %v134_v46 }
  0xad   :  { %p580_p11 = por %p579_p10, %p578_p9 }
  0xae   :  { %403 = vmatpush1.bf16.msra.mxu0 %v524_v20  ;;  %444 = vmatpush1.bf16.msra.mxu1 %v526_v21 }
  0xaf   :  { %404 = vmatprep.subr.bf16.mxu0 %v533_v22  ;;  %445 = vmatprep.subr.bf16.mxu1 %v535_v23  ;;  %p581_p12 = pnand %p580_p11, %p574_p8 }
  0xb2   :  { %405 = vmatpush1.bf16.msra.mxu0 %v532_v24  ;;  %446 = vmatpush1.bf16.msra.mxu1 %v534_v25 }
  0xb5   :  { %538 = vmatmul.mubr.msk.bf16.vlgmr.msra.gmra.mrb[4].mxu0 %vm312_vm0, %v77_v5  ;;  %539 = vmatmul.mubr.msk.bf16.vlgmr.msra.gmra.mrb[4].mxu1 %vm312_vm0, %v77_v5 }
 0x178   :  { %v350_v31 = vpop.f32.mrb[0].mxu0  ;;  %v391_v32 = vpop.f32.mrb[0].mxu1 }
 0x179   :  { %v351_v33 = vadd.f32 %v350_v31, %v115_v27  ;;  %v392_v34 = vadd.f32 %v391_v32, %v123_v28  ;;  %v352_v35 = vpop.f32.mrb[1].mxu0  ;;  %v393_v36 = vpop.f32.mrb[1].mxu1 }
 0x17a   :  { %v353_v37 = vadd.f32 %v352_v35, %v119_v29  ;;  %v394_v38 = vadd.f32 %v393_v36, %v127_v30  ;;  %v354_v39 = vpop.f32.mrb[2].mxu0  ;;  %v395_v40 = vpop.f32.mrb[2].mxu1 }
 0x17b   :  { %480 = vst [vmem:[#allocation5] sm:$0xff] %v351_v33  ;;  %482 = vst [vmem:[#allocation5 + $0x10] sm:$0xff] %v392_v34  ;;  %v355_v41 = vpop.f32.mrb[3].mxu0  ;;  %v396_v42 = vpop.f32.mrb[3].mxu1 }
 0x17c   :  { %481 = vst [vmem:[#allocation5 + $0x8] sm:$0xff] %v353_v37  ;;  %483 = vst [vmem:[#allocation5 + $0x18] sm:$0xff] %v394_v38 }
 0x188   :  { %v432_v52 = vpop.f32.mrb[4].mxu0  ;;  %v473_v53 = vpop.f32.mrb[4].mxu1 }
 0x189   :  { %v433_v54 = vadd.f32 %v432_v52, %v131_v48  ;;  %v474_v55 = vadd.f32 %v473_v53, %v139_v49  ;;  %v434_v56 = vpop.f32.mrb[5].mxu0  ;;  %v475_v57 = vpop.f32.mrb[5].mxu1 }
 0x18a   :  { %v435_v58 = vadd.f32 %v434_v56, %v135_v50  ;;  %v476_v59 = vadd.f32 %v475_v57, %v143_v51  ;;  %v436_v60 = vpop.f32.mrb[6].mxu0  ;;  %v477_v61 = vpop.f32.mrb[6].mxu1 }
 0x18b   :  { %484 = vst [vmem:[#allocation5 + $0x20] sm:$0xff] %v433_v54  ;;  %486 = vst [vmem:[#allocation5 + $0x30] sm:$0xff] %v474_v55  ;;  %v437_v45 = vpop.f32.mrb[7].mxu0  ;;  %v478_v62 = vpop.f32.mrb[7].mxu1 }
 0x18c   :  { %485 = vst [vmem:[#allocation5 + $0x28] sm:$0xff] %v435_v58  ;;  %487 = vst [vmem:[#allocation5 + $0x38] sm:$0xff] %v476_v59 }
 0x18d   :  { %584 = shalt.err (!%p581_p12)
}
 0x18e   :  { %s585_s15 = scalar_lea.hbm %s708_s5, 1024 }
 0x18f   :  { %p586_p13 = scmp.ne.s32.totalorder %s708_s5, %s585_s15  ;;  %p589_p0 = scmp.lt.u32.totalorder %s585_s15, %s708_s5 }
 0x191   :  { %p591_p1 = pnand %p589_p0, %p586_p13 }
 0x193   :  { %594 = shalt.err (!%p591_p1)
}
 0x194   :  { %497 = dma.vmem_to_hbm [thread:$0]  %s495_s11, 1024, %s708_s5, [#allocation4]  }
 0x195   :  { %597 = dma.done.wait [#allocation4], 1024  }
 0x196   :  { %598 = vsyncadd [#allocation4], 4294966272 }
 0x197   :  { %501 = vsyncpa [#allocation3], 1 }
 0x198   :  { %502 = vsyncpa [#allocation4], 1 }

</bundles_post_ra>
